<compile_context>
chip_gen: v7x
topology: tpu7x:2x2x1
jax: 0.10.0
libtpu: 0.0.40
codegen_flags: <defaults>
</compile_context>

<pallas_src>
import jax
import jax.numpy as jnp
from jax.experimental import pallas as pl
from jax.experimental.pallas import tpu as pltpu


LANE = 128
_TARGET_TILE_BYTES = 2 * 1024 * 1024  # ~2 MiB per buffer


# ----------------------------- Pallas kernel ------------------------------- #

def _copy_kernel(mem_ref, out_ref):
    # Whole-tile copy: one vld / one vst per vreg, pipelined by BlockSpec.
    out_ref[...] = mem_ref[...]


# ------------------------------ copy wrapper ------------------------------- #

def _sublane_multiple(dtype) -> int:
    # Sub-32-bit dtypes pack rows along sublanes: 8 (f32), 16 (bf16), 32 (i8).
    return {4: 8, 2: 16, 1: 32}.get(jnp.dtype(dtype).itemsize, 8)


def _choose_lane_width(total: int, sub: int) -> int:
    # Largest lane-dense width (multiple of 128) that still leaves a few
    # tiles' worth of rows; 128 for tiny inputs.
    for w in (1024, 512, 256, 128):
        if total >= w * sub * 4:
            return w
    return LANE


def _pallas_copy(memory):
    """Lane-dense, ~2 MiB-tile Pallas HBM->VMEM->HBM copy of `memory`."""
    orig_shape = memory.shape
    dtype = memory.dtype
    total = memory.size
    if total == 0:
        return memory

    itemsize = jnp.dtype(dtype).itemsize
    sub = _sublane_multiple(dtype)
    w = _choose_lane_width(total, sub)

    # Row tile sized by bytes, aligned to the dtype's sublane packing.
    target_rows = max(sub, (_TARGET_TILE_BYTES // (w * itemsize)) // sub * sub)
    rows = pl.cdiv(total, w)
    rows_aligned = pl.cdiv(rows, sub) * sub
    row_tile = min(target_rows, rows_aligned)
    rows_padded = pl.cdiv(rows, row_tile) * row_tile  # never a whole-array
    padded_total = rows_padded * w                    # degenerate block

    flat = memory.reshape(-1)
    if padded_total != total:
        flat = jnp.pad(flat, (0, padded_total - total))
    x2 = flat.reshape(rows_padded, w)

    out = pl.pallas_call(
        _copy_kernel,
        out_shape=jax.ShapeDtypeStruct((rows_padded, w), dtype),
        grid=(rows_padded // row_tile,),
        in_specs=[pl.BlockSpec((row_tile, w), lambda i: (i, 0))],
        out_specs=pl.BlockSpec((row_tile, w), lambda i: (i, 0)),
        compiler_params=pltpu.CompilerParams(
            # Independent row tiles -> shard across both TCs on v7x
            # (measured no-op on v5e/v6e, harmless).
            dimension_semantics=("parallel",)),
        cost_estimate=pl.CostEstimate(
            flops=0, transcendentals=0,
            bytes_accessed=2 * padded_total * itemsize),
    )(x2)

    out_flat = out.reshape(-1)
    if padded_total != total:
        out_flat = out_flat[:total]
    return out_flat.reshape(orig_shape)


# ------------------------------ module forward ----------------------------- #

def dummy_decoder_forward(tgt, memory, tgt_mask=None, memory_mask=None,
                          tgt_key_padding_mask=None,
                          memory_key_padding_mask=None,
                          use_pallas_copy=False, **kwargs):
    """Pallas implementation of DummyDecoder.forward: returns `memory`.

    All non-`memory` arguments are accepted (and ignored) to mirror the
    PyTorch module's signature.
    """
    del tgt, tgt_mask, memory_mask, tgt_key_padding_mask
    del memory_key_padding_mask, kwargs
    if not use_pallas_copy:
        # Review item #1: the module is a pure pass-through, so the fastest
        # implementation is no kernel at all — zero HBM traffic.
        return memory
    return _pallas_copy(memory)


# --------------------------------- main ------------------------------------ #

if __name__ == "__main__":
    key = jax.random.PRNGKey(0)
    k_tgt, k_mem = jax.random.split(key)

    # Shapes implied by a transformer decoder call: (seq, batch, d_model)
    seq, batch, d_model = 8, 2, 32
    tgt = jax.random.normal(k_tgt, (seq, batch, d_model), jnp.float32)
    memory = jax.random.normal(k_mem, (seq, batch, d_model), jnp.float32)
    tgt_mask = jnp.zeros((seq, seq), jnp.float32)
    memory_mask = jnp.zeros((seq, seq), jnp.float32)
    tgt_key_padding_mask = jnp.zeros((batch, seq), bool)
    memory_key_padding_mask = jnp.zeros((batch, seq), bool)

    # Default (elided) path — the recommended production behaviour.
    out_fast = dummy_decoder_forward(tgt, memory, tgt_mask, memory_mask,
                                     tgt_key_padding_mask,
                                     memory_key_padding_mask)
    assert out_fast.shape == memory.shape
    assert jnp.array_equal(out_fast, memory)

    # Pallas copy path — exercises the kernel (lane-dense tiles + padding).
    out_pallas = dummy_decoder_forward(tgt, memory, tgt_mask, memory_mask,
                                       tgt_key_padding_mask,
                                       memory_key_padding_mask,
                                       use_pallas_copy=True)
    out_pallas = jax.block_until_ready(out_pallas)

    assert out_pallas.shape == memory.shape
    assert jnp.array_equal(out_pallas, memory), \
        "DummyDecoder must return `memory` unchanged"

    print("KERNEL_OK")
</pallas_src>

<mosaic_0001>
module attributes {stable_mosaic.version = 11 : i64} {
  func.func @_copy_kernel(%arg0: i32, %arg1: memref<8x128xf32, #tpu.memory_space<vmem>>, %arg2: memref<8x128xf32, #tpu.memory_space<vmem>>) attributes {dimension_semantics = [#tpu.dimension_semantics<parallel>], iteration_bounds = array<i64: 1>, scalar_prefetch = 0 : i64, scratch_operands = 0 : i64, tpu.core_type = #tpu.core_type<tc>, window_params = [{transform_indices = @transform_0, window_bounds = array<i64: 8, 128>}, {transform_indices = @transform_1, window_bounds = array<i64: 8, 128>}]} {
    %c0 = arith.constant 0 : index
    %c0_0 = arith.constant 0 : index
    %0 = vector.load %arg1[%c0, %c0_0] : memref<8x128xf32, #tpu.memory_space<vmem>>, vector<8x128xf32>
    %c0_1 = arith.constant 0 : index
    %c0_2 = arith.constant 0 : index
    %1 = vector.load %arg2[%c0_1, %c0_2] : memref<8x128xf32, #tpu.memory_space<vmem>>, vector<8x128xf32>
    tpu.vector_store %arg2[%c0_1, %c0_2], %0 {strides = array<i32>} : memref<8x128xf32, #tpu.memory_space<vmem>>, vector<8x128xf32>,
    return
  }
  func.func @transform_0(%arg0: i32) -> (i32, i32) {
    %c0_i32 = arith.constant 0 : i32
    %c0_i32_0 = arith.constant 0 : i32
    return %arg0, %c0_i32 : i32, i32
  }
  func.func @transform_1(%arg0: i32) -> (i32, i32) {
    %c0_i32 = arith.constant 0 : i32
    %c0_i32_0 = arith.constant 0 : i32
    return %arg0, %c0_i32 : i32, i32
  }
}

</mosaic_0001>

<bundles_post_ra>
// kernel: tpu_custom_call.1
= control target key start
LH: loop header
LB: loop body
LE: loop exit
PB: predicated region body
PF: predicated region fallthrough
CT: control target
= control target key end

     0   :  { %6 = vsyncpa [#allocation3], 0  ;;  %s124_s0 = inlined_call_operand.hbm [shape: f32[8,128], index: 0, kind: input, shape index: {}]   ;;  %s125_s1 = inlined_call_operand.hbm [shape: f32[8,128], index: 1, kind: output, shape index: {}]  }
   0x1   :  { %7 = vsyncpa [#allocation4], 0  ;;  %s88_s6 = smov [#allocation2]   ;;  %s40_s10 = scalar_lea.hbm %s124_s0, 128 }
   0x2   :  { %s14_s7 = sshll.u32 %s88_s6, 4  ;;  %p41_p0 = scmp.ne.s32.totalorder %s124_s0, %s40_s10  ;;  %s15_s7 = int_to_ptr.vmem [resolvable:$true] %s14_s7 }
   0x3   :  { %p44_p1 = scmp.lt.u32.totalorder %s40_s10, %s124_s0 }
   0x5   :  { %p46_p2 = pnand %p44_p1, %p41_p0 }
   0x7   :  { %49 = shalt.err (!%p46_p2)
}
   0x8   :  { %s50_s15 = scalar_lea.vmem %s15_s7, 128  ;;  %p55_p4 = scmp.lt.s32.totalorder %s15_s7, %s15_s7 }
   0x9   :  { %p51_p3 = scmp.ne.s32.totalorder %s15_s7, %s50_s15  ;;  %p56_p5 = scmp.lt.s32.totalorder %s50_s15, %s50_s15 }
   0xb   :  { %p57_p6 = por %p56_p5, %p55_p4 }
   0xd   :  { %p58_p7 = pnand %p57_p6, %p51_p3 }
   0xf   :  { %61 = shalt.err (!%p58_p7)
}
  0x10   :  { %17 = dma.hbm_to_vmem [thread:$0]  %s124_s0, 128, %s15_s7, [#allocation3]  }
  0x11   :  { %84 = dma.done.wait [#allocation3], 128  }
  0x12   :  { %85 = vsyncadd [#allocation3], 4294967168  ;;  %s89_s18 = smov [#allocation5]   ;;  %v21_v0 = vld [vmem:[#allocation2] sm:$0xff] }
  0x13   :  { %s29_s19 = sshll.u32 %s89_s18, 4  ;;  %22 = vst [vmem:[#allocation5] sm:$0xff] %v21_v0  ;;  %s30_s19 = int_to_ptr.vmem [resolvable:$true] %s29_s19 }
  0x14   :  { %s62_s20 = scalar_lea.vmem %s30_s19, 128  ;;  %p67_p9 = scmp.lt.s32.totalorder %s30_s19, %s30_s19 }
  0x15   :  { %p63_p8 = scmp.ne.s32.totalorder %s30_s19, %s62_s20  ;;  %p68_p10 = scmp.lt.s32.totalorder %s62_s20, %s62_s20 }
  0x17   :  { %p69_p11 = por %p68_p10, %p67_p9 }
  0x19   :  { %p70_p12 = pnand %p69_p11, %p63_p8 }
  0x1b   :  { %73 = shalt.err (!%p70_p12)
}
  0x1c   :  { %s74_s23 = scalar_lea.hbm %s125_s1, 128 }
  0x1d   :  { %p75_p13 = scmp.ne.s32.totalorder %s125_s1, %s74_s23  ;;  %p78_p0 = scmp.lt.u32.totalorder %s74_s23, %s125_s1 }
  0x1f   :  { %p80_p1 = pnand %p78_p0, %p75_p13 }
  0x21   :  { %83 = shalt.err (!%p80_p1)
}
  0x22   :  { %32 = dma.vmem_to_hbm [thread:$0]  %s30_s19, 128, %s125_s1, [#allocation4]  }
  0x23   :  { %86 = dma.done.wait [#allocation4], 128  }
  0x24   :  { %87 = vsyncadd [#allocation4], 4294967168 }
  0x25   :  { %36 = vsyncpa [#allocation3], 1 }
  0x26   :  { %37 = vsyncpa [#allocation4], 1 }

</bundles_post_ra>
